<compile_context>
chip_gen: v7x
topology: tpu7x:2x2x1
jax: 0.10.0
libtpu: 0.0.40
codegen_flags: <defaults>
</compile_context>

<pallas_src>
import functools

import jax
import jax.numpy as jnp
from jax.experimental import pallas as pl
from jax.experimental.pallas import tpu as pltpu


def _prompt_kernel(x_ref, prompt_ref, o_ref, *, t_pad, l_pad, h, w):
    # x_ref:      (bt, C, H, W)     un-padded input images (bt batch elements)
    # prompt_ref: (C, OUT, OUT)     precomputed sigmoid(program) * mask (batch-invariant)
    # o_ref:      (bt, C, OUT, OUT) output canvas
    bt, c = x_ref.shape[0], x_ref.shape[1]
    out = prompt_ref.shape[-1]
    r_edge = l_pad + w
    b_edge = t_pad + h

    prompt = prompt_ref[...]                      # (C, OUT, OUT)
    x = x_ref[...]                                # (bt, C, H, W)

    # --- middle rows [t_pad, t_pad+h): insert x into columns [l_pad, l_pad+w) ---
    pm = prompt[:, t_pad:b_edge, :]               # (C, H, OUT)
    center = pm[None, :, :, l_pad:r_edge] + x     # (bt, C, H, W)
    cols = []
    if l_pad > 0:
        cols.append(jnp.broadcast_to(pm[None, :, :, :l_pad], (bt, c, h, l_pad)))
    cols.append(center)
    if r_edge < out:
        cols.append(
            jnp.broadcast_to(pm[None, :, :, r_edge:], (bt, c, h, out - r_edge)))
    mid = cols[0] if len(cols) == 1 else jnp.concatenate(cols, axis=3)

    # --- stack top band / middle / bottom band ---
    rows = []
    if t_pad > 0:
        rows.append(
            jnp.broadcast_to(prompt[None, :, :t_pad, :], (bt, c, t_pad, out)))
    rows.append(mid)
    if b_edge < out:
        rows.append(
            jnp.broadcast_to(prompt[None, :, b_edge:, :],
                             (bt, c, out - b_edge, out)))
    canvas = rows[0] if len(rows) == 1 else jnp.concatenate(rows, axis=2)

    # Single unmasked full-slab store (no RMW on o_ref).
    o_ref[...] = canvas.astype(o_ref.dtype)


def _choose_batch_tile(b, c, h, w, out_size, itemsize):
    """Largest divisor of b that fits a ~24 MiB double-buffered VMEM budget and
    keeps the grid >= 2 steps (so v7x's two TensorCores both get work)."""
    per_elem = 2 * c * (h * w + out_size * out_size) * itemsize  # double-buffered
    resident = c * out_size * out_size * itemsize                # prompt, copied once
    budget = 24 * 1024 * 1024
    vmem_cap = max(1, (budget - resident) // max(per_elem, 1))
    cap = int(min(16, vmem_cap))
    if b >= 2:
        cap = min(cap, (b + 1) // 2)   # keep at least 2 grid steps
    cap = max(cap, 1)
    for bt in range(cap, 0, -1):       # prefer an exact divisor (no ragged block)
        if b % bt == 0:
            return bt
    return 1


def expansive_visual_prompt(x, program, mask_padded, out_size):
    """x: (B, C, H, W); program/mask_padded: (3, out_size, out_size)."""
    # Mirror the module's shape normalization.
    while x.ndim < 4:
        x = x[None]
    while x.ndim > 4:
        x = jnp.squeeze(x, axis=1)

    b, c, h, w = x.shape
    l_pad = (out_size - w) // 2
    t_pad = (out_size - h) // 2

    # Hoist the batch-invariant prompt out of the per-step loop: O(C*OUT^2)
    # once here vs O(B*C*OUT^2) transcendentals inside the kernel.
    prompt = (jax.nn.sigmoid(program) * mask_padded).astype(jnp.float32)

    itemsize = jnp.dtype(x.dtype).itemsize
    bt = _choose_batch_tile(b, c, h, w, out_size, itemsize)
    grid = (b // bt,)

    kernel = functools.partial(
        _prompt_kernel, t_pad=t_pad, l_pad=l_pad, h=h, w=w)

    flops = b * c * out_size * out_size                     # one add per output elem
    bytes_accessed = (b * c * (h * w + out_size * out_size)
                      + c * out_size * out_size) * itemsize

    return pl.pallas_call(
        kernel,
        out_shape=jax.ShapeDtypeStruct((b, c, out_size, out_size), x.dtype),
        grid=grid,
        in_specs=[
            # Un-padded input: (bt, C, H, W) slab per batch step.
            pl.BlockSpec((bt, c, h, w), lambda i: (i, 0, 0, 0)),
            # Prompt: constant block index across the grid -> copied once, resident.
            pl.BlockSpec((c, out_size, out_size), lambda i: (0, 0, 0)),
        ],
        out_specs=pl.BlockSpec((bt, c, out_size, out_size),
                               lambda i: (i, 0, 0, 0)),
        compiler_params=pltpu.CompilerParams(
            dimension_semantics=("parallel",),
            vmem_limit_bytes=32 * 1024 * 1024,
        ),
        cost_estimate=pl.CostEstimate(
            flops=flops, transcendentals=0, bytes_accessed=bytes_accessed),
    )(x, prompt)


def _build_params(key, in_size, out_size):
    """Deterministic synthetic parameters mirroring the module's __init__."""
    k_mask, k_prog = jax.random.split(key)
    mask2d = (jax.random.uniform(k_mask, (in_size, in_size)) > 0.5).astype(jnp.float32)
    mask3 = jnp.repeat(mask2d[None, :, :], 3, axis=0)
    l_pad = (out_size - in_size) // 2
    r_pad = out_size - in_size - l_pad
    mask_padded = jnp.pad(mask3, ((0, 0), (l_pad, r_pad), (l_pad, r_pad)),
                          constant_values=1.0)
    program = jax.random.normal(k_prog, (3, out_size, out_size), dtype=jnp.float32)
    return program, mask_padded


def _reference(x, program, mask_padded, out_size):
    b, c, h, w = x.shape
    l_pad = (out_size - w) // 2
    r_pad = out_size - w - l_pad
    t_pad = (out_size - h) // 2
    b_pad = out_size - h - t_pad
    x_pad = jnp.pad(x, ((0, 0), (0, 0), (t_pad, b_pad), (l_pad, r_pad)))
    return x_pad + (jax.nn.sigmoid(program) * mask_padded)[None]


if __name__ == "__main__":
    key = jax.random.PRNGKey(0)
    k_x, k_params = jax.random.split(key)

    in_size = 16      # original image / mask spatial size
    out_size = 32     # prompt canvas size
    batch, channels = 2, 3

    x = jax.random.normal(k_x, (batch, channels, in_size, in_size),
                          dtype=jnp.float32)
    program, mask_padded = _build_params(k_params, in_size, out_size)

    out = expansive_visual_prompt(x, program, mask_padded, out_size)
    out = jax.block_until_ready(out)

    ref = _reference(x, program, mask_padded, out_size)
    assert out.shape == (batch, channels, out_size, out_size)
    assert jnp.allclose(out, ref, atol=1e-5, rtol=1e-5), "mismatch vs reference"

    print("KERNEL_OK")
</pallas_src>

<mosaic_0001>
module attributes {stable_mosaic.version = 11 : i64} {
  func.func @_prompt_kernel(%arg0: i32, %arg1: memref<1x3x16x16xf32, #tpu.memory_space<vmem>>, %arg2: memref<3x32x32xf32, #tpu.memory_space<vmem>>, %arg3: memref<1x3x32x32xf32, #tpu.memory_space<vmem>>) attributes {dimension_semantics = [#tpu.dimension_semantics<parallel>], iteration_bounds = array<i64: 2>, scalar_prefetch = 0 : i64, scratch_operands = 0 : i64, tpu.core_type = #tpu.core_type<tc>, window_params = [{transform_indices = @transform_0, window_bounds = array<i64: 1, 3, 16, 16>}, {pipeline_mode = #tpu.pipeline_mode<synchronous>, transform_indices = @transform_1, window_bounds = array<i64: 3, 32, 32>}, {transform_indices = @transform_2, window_bounds = array<i64: 1, 3, 32, 32>}]} {
    %c0 = arith.constant 0 : index
    %c0_0 = arith.constant 0 : index
    %c0_1 = arith.constant 0 : index
    %0 = vector.load %arg2[%c0, %c0_0, %c0_1] : memref<3x32x32xf32, #tpu.memory_space<vmem>>, vector<3x32x32xf32>
    %c0_2 = arith.constant 0 : index
    %c0_3 = arith.constant 0 : index
    %c0_4 = arith.constant 0 : index
    %c0_5 = arith.constant 0 : index
    %1 = vector.load %arg1[%c0_2, %c0_3, %c0_4, %c0_5] : memref<1x3x16x16xf32, #tpu.memory_space<vmem>>, vector<1x3x16x16xf32>
    %2 = vector.extract_strided_slice %0 {offsets = [0, 8, 0], sizes = [3, 16, 32], strides = [1, 1, 1]} : vector<3x32x32xf32> to vector<3x16x32xf32>
    %3 = vector.extract_strided_slice %2 {offsets = [0, 0, 8], sizes = [3, 16, 16], strides = [1, 1, 1]} : vector<3x16x32xf32> to vector<3x16x16xf32>
    %4 = vector.shape_cast %3 : vector<3x16x16xf32> to vector<1x3x16x16xf32>
    %5 = arith.addf %4, %1 : vector<1x3x16x16xf32>
    %6 = vector.extract_strided_slice %2 {offsets = [0, 0, 0], sizes = [3, 16, 8], strides = [1, 1, 1]} : vector<3x16x32xf32> to vector<3x16x8xf32>
    %7 = vector.shape_cast %6 : vector<3x16x8xf32> to vector<1x3x16x8xf32>
    %8 = vector.extract_strided_slice %2 {offsets = [0, 0, 24], sizes = [3, 16, 8], strides = [1, 1, 1]} : vector<3x16x32xf32> to vector<3x16x8xf32>
    %9 = vector.shape_cast %8 : vector<3x16x8xf32> to vector<1x3x16x8xf32>
    %10 = tpu.concatenate %7, %5, %9 in 3 : vector<1x3x16x8xf32>, vector<1x3x16x16xf32>, vector<1x3x16x8xf32> -> vector<1x3x16x32xf32>
    %11 = vector.extract_strided_slice %0 {offsets = [0, 0, 0], sizes = [3, 8, 32], strides = [1, 1, 1]} : vector<3x32x32xf32> to vector<3x8x32xf32>
    %12 = vector.shape_cast %11 : vector<3x8x32xf32> to vector<1x3x8x32xf32>
    %13 = vector.extract_strided_slice %0 {offsets = [0, 24, 0], sizes = [3, 8, 32], strides = [1, 1, 1]} : vector<3x32x32xf32> to vector<3x8x32xf32>
    %14 = vector.shape_cast %13 : vector<3x8x32xf32> to vector<1x3x8x32xf32>
    %15 = tpu.concatenate %12, %10, %14 in 2 : vector<1x3x8x32xf32>, vector<1x3x16x32xf32>, vector<1x3x8x32xf32> -> vector<1x3x32x32xf32>
    %c0_6 = arith.constant 0 : index
    %c0_7 = arith.constant 0 : index
    %c0_8 = arith.constant 0 : index
    %c0_9 = arith.constant 0 : index
    %16 = vector.load %arg3[%c0_6, %c0_7, %c0_8, %c0_9] : memref<1x3x32x32xf32, #tpu.memory_space<vmem>>, vector<1x3x32x32xf32>
    tpu.vector_store %arg3[%c0_6, %c0_7, %c0_8, %c0_9], %15 {strides = array<i32>} : memref<1x3x32x32xf32, #tpu.memory_space<vmem>>, vector<1x3x32x32xf32>,
    return
  }
  func.func @transform_0(%arg0: i32) -> (i32, i32, i32, i32) {
    %c0_i32 = arith.constant 0 : i32
    %c0_i32_0 = arith.constant 0 : i32
    %c0_i32_1 = arith.constant 0 : i32
    %c0_i32_2 = arith.constant 0 : i32
    return %arg0, %c0_i32, %c0_i32_0, %c0_i32_1 : i32, i32, i32, i32
  }
  func.func @transform_1(%arg0: i32) -> (i32, i32, i32) {
    %c0_i32 = arith.constant 0 : i32
    %c0_i32_0 = arith.constant 0 : i32
    %c0_i32_1 = arith.constant 0 : i32
    %c0_i32_2 = arith.constant 0 : i32
    return %c0_i32, %c0_i32_0, %c0_i32_1 : i32, i32, i32
  }
  func.func @transform_2(%arg0: i32) -> (i32, i32, i32, i32) {
    %c0_i32 = arith.constant 0 : i32
    %c0_i32_0 = arith.constant 0 : i32
    %c0_i32_1 = arith.constant 0 : i32
    %c0_i32_2 = arith.constant 0 : i32
    return %arg0, %c0_i32, %c0_i32_0, %c0_i32_1 : i32, i32, i32, i32
  }
}

</mosaic_0001>

<bundles_post_ra>
// kernel: tpu_custom_call.1
= control target key start
LH: loop header
LB: loop body
LE: loop exit
PB: predicated region body
PF: predicated region fallthrough
CT: control target
= control target key end

     0   :  { %7 = vsyncpa [#allocation3], 0  ;;  %s831_s0 = inlined_call_operand.hbm [shape: f32[2,3,16,16], index: 0, kind: input, shape index: {}]   ;;  %s832_s1 = inlined_call_operand.hbm [shape: f32[3,32,32], index: 1, kind: input, shape index: {}]   ;;  %s833_s2 = inlined_call_operand.hbm [shape: f32[2,3,32,32], index: 2, kind: output, shape index: {}]  }
   0x1   :  { %9 = vsyncpa [#allocation3 + $0x1], 0 }
   0x2   :  { %10 = vsyncpa [#allocation6], 0 }
   0x3   :  { %11 = vsyncpa [#allocation4], 0 }
   0x4   :  { %13 = vsyncpa [#allocation4 + $0x1], 0  ;;  %s577_s9 = smov 0   ;;  %s579_s10 = smov 0  }
   0x5   :  { %s581_s11 = smov 0   ;;  %s583_s12 = smov 0  }
   0x6 LB: > { %s598_s13 = sadd.s32 4294967295, %s553_s12   ;;  %s349_s14 = sadd.s32 4294967294, %s553_s12   ;;  %s553_s12 = sphi %s583_s12, %s853_s12   ;;  %s549_s11 = sphi %s581_s11, %s852_s11   ;;  %s545_s10 = sphi %s579_s10, %s851_s10   ;;  %s541_s9 = sphi %s577_s9, %s850_s9  }
   0x7   : > { %p39_p0 = scmp.ne.s32.totalorder %s545_s10, %s541_s9  ;;  %p834_p1 = scmp.eq.s32.totalorder %s598_s13, 0 }
   0x8   : > { %p90_p3 = scmp.eq.s32.totalorder %s349_s14, 1  ;;  %p350_p5 = scmp.ge.s32.totalorder %s553_s12, 1 }
   0x9   : > { %p607_p4 = por %p834_p1, %p39_p0  ;;  %p97_p7 = scmp.lt.s32.totalorder %s553_s12, 3 }
   0xa   : > { %p612_p6 = por %p90_p3, %p39_p0  ;;  %s555_s18 = smov [#allocation5]  }
   0xb   : > { %s837_s15 = scalar_select %p607_p4, 1, 0 }
   0xc   : > { %s838_s16 = scalar_select %p612_p6, 1, 0 }
   0xd   : > { %p617_p8 = pnand %p350_p5, %p97_p7  ;;  %s109_s19 = sshll.u32 %s555_s18, 4  ;;  %s621_s19 = int_to_ptr.vmem [resolvable:$true] %s109_s19 }
   0xe   : > { %s633_s21 = sadd.s32 1, %s553_s12   ;;  %s26_s22 = sadd.s32 1, %s549_s11 }
   0xf   : > { %s839_s17 = scalar_select %p617_p8, 1, 0 }
  0x10   : > { %p372_p9 = pneg %p617_p8  ;;  %s23_s23 = ssub.s32 %s553_s12, %s633_s21 }
  0x11   : > { %s425_s26 = scalar_lea.hbm %s832_s1, 1536 }
  0x12   : > { %p628_p11 = pnand %p372_p9, %p834_p1  ;;  %p426_p12 = scmp.ne.s32.totalorder %s832_s1, %s425_s26 }
  0x13   : > { %p432_p5 = scmp.lt.u32.totalorder %s425_s26, %s832_s1 }
  0x14   : > { %p427_p13 = pneg %p628_p11 }
  0x16   : > { %p428_p0 = pnand %p427_p13, %p426_p12 }
  0x18   : > { %p429_p3 = pneg %p428_p0 }
  0x1a   : > { %p434_p7 = pnand %p432_p5, %p429_p3 }
  0x1c   : > { %437 = shalt.err (!%p434_p7)
}
  0x1d   : > { %s438_s3 = scalar_lea.vmem %s621_s19, 1536  ;;  %p446_p2 = scmp.lt.s32.totalorder %s621_s19, %s621_s19 }
  0x1e   : > { %p439_p9 = scmp.ne.s32.totalorder %s621_s19, %s438_s3  ;;  %p447_p6 = scmp.lt.s32.totalorder %s438_s3, %s438_s3 }
  0x20   : > { %p441_p10 = pnand %p439_p9, %p427_p13  ;;  %p448_p4 = por %p447_p6, %p446_p2 }
  0x22   : > { %p442_p1 = pneg %p441_p10 }
  0x24   : > { %p449_p8 = pnand %p448_p4, %p442_p1 }
  0x26   : > { %452 = shalt.err (!%p449_p8)
}
  0x27   : > { %s556_s4 = smov 128   ;;  %s557_s5 = smov 8  }
  0x28   : > { %375 = dma.hbm_to_vmem [thread:$0]  (!%p628_p11), %s832_s1, 1536, %s621_s19, [#allocation6], %s556_s4, %s556_s4, %s557_s5  }
  0x29   : > { %p24_p1 = scmp.eq.s32.totalorder %s23_s23, 0  ;;  %p33_p2 = scmp.ne.s32.totalorder %s549_s11, %s545_s10 }
  0x2a   : > { %p34_p4 = scmp.eq.s32.totalorder %s553_s12, 0  ;;  %p385_p6 = scmp.lt.s32.totalorder %s553_s12, 2 }
  0x2b   : > { %s667_s8 = scalar_select %p24_p1, %s549_s11, %s26_s22  }
  0x2c   : > { %p35_p8 = por %p34_p4, %p33_p2  ;;  %p841_p10 = scmp.eq.s32.totalorder %s598_s13, 1 }
  0x2d   : > { %s123_s18 = sand.u32 1, %s549_s11   ;;  %s360_s20 = smul.u32 768, %s553_s12 }
  0x2e   : > { %p671_p12 = por %p841_p10, %p33_p2  ;;  %s359_s24 = smul.u32 48, %s123_s18 }
  0x2f   : > { %p677_p13 = pnand %p385_p6, %p35_p8  ;;  %s684_s22 = scalar_lea.hbm %s831_s0, %s360_s20 }
  0x30   : > { %s127_s26 = scalar_lea.vmem [#allocation2], %s359_s24  ;;  %s688_s28 = scalar_lea.sflag [#allocation3], %s123_s18 }
  0x31   : > { %s134_s27 = sshll.u32 %s127_s26, 4  ;;  %s453_s29 = scalar_lea.hbm %s684_s22, 768  ;;  %s686_s27 = int_to_ptr.vmem [resolvable:$true] %s134_s27 }
  0x32   : > { %p454_p11 = scmp.ne.s32.totalorder %s684_s22, %s453_s29  ;;  %p455_p0 = pneg %p677_p13 }
  0x33   : > { %s458_s6 = scalar_lea.hbm %s831_s0, 1536  ;;  %p459_p7 = scmp.lt.u32.totalorder %s684_s22, %s831_s0 }
  0x34   : > { %p456_p3 = pnand %p455_p0, %p454_p11  ;;  %p460_p9 = scmp.lt.u32.totalorder %s458_s6, %s453_s29 }
  0x35   : > { %p462_p2 = scmp.lt.u32.totalorder %s453_s29, %s684_s22 }
  0x36   : > { %p457_p5 = pneg %p456_p3  ;;  %p461_p1 = por %p460_p9, %p459_p7 }
  0x38   : > { %p463_p4 = por %p462_p2, %p461_p1 }
  0x3a   : > { %p464_p6 = pnand %p463_p4, %p457_p5 }
  0x3c   : > { %467 = shalt.err (!%p464_p6)
}
  0x3d   : > { %s468_s18 = scalar_lea.vmem %s686_s27, 768  ;;  %s558_s24 = smov [#allocation2]  }
  0x3e   : > { %p469_p8 = scmp.ne.s32.totalorder %s686_s27, %s468_s18  ;;  %s473_s19 = sshll.u32 %s558_s24, 4  ;;  %s474_s19 = int_to_ptr.vmem [resolvable:$false] %s473_s19 }
  0x3f   : > { %s475_s23 = scalar_lea.vmem %s474_s19, 1536  ;;  %p476_p3 = scmp.lt.s32.totalorder %s686_s27, %s474_s19 }
  0x40   : > { %p471_p10 = pnand %p469_p8, %p455_p0  ;;  %p477_p7 = scmp.lt.s32.totalorder %s475_s23, %s468_s18 }
  0x42   : > { %p472_p11 = pneg %p471_p10  ;;  %p478_p9 = por %p477_p7, %p476_p3 }
  0x44   : > { %p479_p1 = pnand %p478_p9, %p472_p11 }
  0x46   : > { %482 = shalt.err (!%p479_p1)
}
  0x47   : > { %379 = dma.hbm_to_vmem [thread:$0]  (!%p677_p13), %s684_s22, 768, %s686_s27, %s688_s28, %s556_s4, %s556_s4, %s557_s5  }
  0x48   : > { %p844_p0 = scmp.ne.s32.totalorder %s839_s17, 0 }
  0x49   : > { %s722_s26 = sand.u32 (!%p844_p0), 1, %s545_s10   ;;  %p845_p5 = scmp.ne.s32.totalorder (!%p844_p0), %s837_s15, 0 }
  0x4a   : > { %146 = sbr.rel (%p844_p0) target bundleno = 228 (0xe4), region = 28  ;;  %s149_s30 = scalar_lea.sflag (!%p844_p0), [#allocation3], %s722_s26 }
  0x4b   : > { %s361_s29 = smul.u32 (!%p844_p0), 48, %s722_s26 }
  0x4d   : > { %s152_s3 = scalar_lea.vmem (!%p844_p0), [#allocation2], %s361_s29 }
  0x51   : > { %528 = dma.done.wait (%p845_p5), %s149_s30, 768  }
  0x52   : > { %530 = vsyncadd (%p845_p5), %s149_s30, 4294966528  ;;  %p846_p2 = scmp.eq.s32.totalorder %s598_s13, 0 }
  0x54   : > { %532 = dma.done.wait (%p846_p2), [#allocation6], 1536   ;;  %p847_p13 = pmov %p846_p2 }
  0x55   : > { %v191_v0 = vld [vmem:[%s152_s3 + $0x10] sm:$0xff]  ;;  %v189_v1 = vld [vmem:[%s152_s3] sm:$0xff]  ;;  %s362_s17 = smul.u32 96, %s722_s26  ;;  %s559_s4 = smov 8   ;;  %v192_v2 = vld [vmem:[%s152_s3 + $0x18] sm:$0xff]  ;;  %vm239_vm0 = vcmask 261120  }
  0x56   : > { %534 = vsyncadd (%p847_p13), [#allocation6], 4294965760  ;;  %205 = vrot.lane.b32.xlu1 %v191_v0, %s559_s4  ;;  %201 = vrot.lane.b32.xlu0 %v189_v1, %s559_s4  ;;  %v190_v3 = vld [vmem:[%s152_s3 + $0x8] sm:$0xff]  ;;  %v177_v4 = vld [vmem:[#allocation5] sm:$0xff]  ;;  %vm225_vm1 = vcmask 64512   ;;  %vm232_vm2 = vcmask 195584  }
  0x57   : > { %v180_v5 = vld [vmem:[#allocation5 + $0x18] sm:$0xff]  ;;  %v181_v6 = vld [vmem:[#allocation5 + $0x20] sm:$0xff]  ;;  %s739_s15 = scalar_lea.vmem [#allocation7], %s362_s17  ;;  %v182_v12 = vld [vmem:[#allocation5 + $0x28] sm:$0xff]  ;;  %s363_s5 = smul.u32 1536, %s598_s13 }
  0x58   : > { %v184_v7 = vld [vmem:[#allocation5 + $0x38] sm:$0xff]  ;;  %v185_v8 = vld [vmem:[#allocation5 + $0x40] sm:$0xff]  ;;  %240 = vst.msk [vmem:[%s739_s15] sm:$0xff] %vm239_vm0, %v177_v4  ;;  %243 = vst.msk [vmem:[%s739_s15 + $0x18] sm:$0xff] %vm239_vm0, %v180_v5  ;;  %s266_s25 = sshll.u32 %s739_s15, 4  ;;  %s253_s28 = scalar_lea.sflag [#allocation4], %s722_s26  ;;  %s780_s25 = int_to_ptr.vmem [resolvable:$true] %s266_s25 }
  0x59   : > { %v188_v9 = vld [vmem:[#allocation5 + $0x58] sm:$0xff]  ;;  %244 = vst.msk [vmem:[%s739_s15 + $0x20] sm:$0xff] %vm239_vm0, %v181_v6  ;;  %v193_v11 = vld [vmem:[%s152_s3 + $0x20] sm:$0xff]  ;;  %247 = vst.msk [vmem:[%s739_s15 + $0x38] sm:$0xff] %vm239_vm0, %v184_v7  ;;  %s776_s27 = scalar_lea.hbm %s833_s2, %s363_s5  ;;  %s483_s6 = scalar_lea.vmem %s780_s25, 1536 }
  0x5a   : > { %207 = vrot.lane.b32.xlu1 %v192_v2, %s559_s4  ;;  %203 = vrot.lane.b32.xlu0 %v190_v3, %s559_s4  ;;  %v194_v10 = vld [vmem:[%s152_s3 + $0x28] sm:$0xff]  ;;  %248 = vst.msk [vmem:[%s739_s15 + $0x40] sm:$0xff] %vm239_vm0, %v185_v8  ;;  %v183_v18 = vld [vmem:[#allocation5 + $0x30] sm:$0xff]  ;;  %p484_p4 = scmp.ne.s32.totalorder %s780_s25, %s483_s6  ;;  %s560_s7 = smov [#allocation7]  }
  0x5b   : > { %251 = vst.msk [vmem:[%s739_s15 + $0x58] sm:$0xff] %vm239_vm0, %v188_v9  ;;  %v178_v13 = vld [vmem:[#allocation5 + $0x8] sm:$0xff]  ;;  %v179_v19 = vld [vmem:[#allocation5 + $0x10] sm:$0xff]  ;;  %s487_s20 = sshll.u32 %s560_s7, 4  ;;  %s488_s20 = int_to_ptr.vmem [resolvable:$false] %s487_s20 }
  0x5c   : > { %v187_v28 = vld [vmem:[#allocation5 + $0x50] sm:$0xff]  ;;  %v186_v29 = vld [vmem:[#allocation5 + $0x48] sm:$0xff]  ;;  %p485_p6 = pnand %p484_p4, %p671_p12  ;;  %s489_s18 = scalar_lea.vmem %s488_s20, 3072 }
  0x5d   : > { %p490_p10 = scmp.lt.s32.totalorder %s780_s25, %s488_s20  ;;  %p491_p11 = scmp.lt.s32.totalorder %s489_s18, %s483_s6 }
  0x5e   : > { %211 = vrot.lane.b32.xlu1 %v194_v10, %s559_s4  ;;  %209 = vrot.lane.b32.xlu0 %v193_v11, %s559_s4  ;;  %p486_p8 = pneg %p485_p6 }
  0x5f   : > { %p492_p3 = por %p491_p11, %p490_p10 }
  0x61   : > { %p493_p7 = pnand %p492_p3, %p486_p8 }
  0xc8   : > { %v206_v14 = vpop.permute.xlu1 %205  ;;  %v202_v15 = vpop.permute.xlu0 %201 }
  0xc9   : > { %v221_v16 = vadd.f32 %v206_v14, %v182_v12  ;;  %v219_v17 = vadd.f32 %v202_v15, %v178_v13 }
  0xcb   : > { %v228_v20 = vsel %vm225_vm1, %v182_v12, %v221_v16  ;;  %v226_v21 = vsel %vm225_vm1, %v178_v13, %v219_v17 }
  0xcc   : > { %v235_v22 = vsel %vm232_vm2, %v228_v20, %v182_v12  ;;  %v233_v23 = vsel %vm232_vm2, %v226_v21, %v178_v13  ;;  %v208_v24 = vpop.permute.xlu1 %207  ;;  %v204_v25 = vpop.permute.xlu0 %203 }
  0xcd   : > { %245 = vst.msk [vmem:[%s739_s15 + $0x28] sm:$0xff] %vm239_vm0, %v235_v22  ;;  %241 = vst.msk [vmem:[%s739_s15 + $0x8] sm:$0xff] %vm239_vm0, %v233_v23  ;;  %v222_v26 = vadd.f32 %v208_v24, %v183_v18  ;;  %v220_v27 = vadd.f32 %v204_v25, %v179_v19 }
  0xcf   : > { %v229_v30 = vsel %vm225_vm1, %v183_v18, %v222_v26  ;;  %v227_v31 = vsel %vm225_vm1, %v179_v19, %v220_v27 }
  0xd0   : > { %v236_v32 = vsel %vm232_vm2, %v229_v30, %v183_v18  ;;  %v234_v33 = vsel %vm232_vm2, %v227_v31, %v179_v19  ;;  %v212_v34 = vpop.permute.xlu1 %211  ;;  %v210_v35 = vpop.permute.xlu0 %209 }
  0xd1   : > { %246 = vst.msk [vmem:[%s739_s15 + $0x30] sm:$0xff] %vm239_vm0, %v236_v32  ;;  %242 = vst.msk [vmem:[%s739_s15 + $0x10] sm:$0xff] %vm239_vm0, %v234_v33  ;;  %v224_v36 = vadd.f32 %v212_v34, %v187_v28  ;;  %v223_v37 = vadd.f32 %v210_v35, %v186_v29 }
  0xd3   : > { %v231_v38 = vsel %vm225_vm1, %v187_v28, %v224_v36  ;;  %v230_v39 = vsel %vm225_vm1, %v186_v29, %v223_v37 }
  0xd4   : > { %v238_v40 = vsel %vm232_vm2, %v231_v38, %v187_v28  ;;  %v237_v41 = vsel %vm232_vm2, %v230_v39, %v186_v29 }
  0xd5   : > { %250 = vst.msk [vmem:[%s739_s15 + $0x50] sm:$0xff] %vm239_vm0, %v238_v40  ;;  %249 = vst.msk [vmem:[%s739_s15 + $0x48] sm:$0xff] %vm239_vm0, %v237_v41 }
  0xd6   : > { %496 = shalt.err (!%p493_p7)
}
  0xd7   : > { %s497_s24 = scalar_lea.hbm %s776_s27, 1536  ;;  %s501_s29 = scalar_lea.hbm %s833_s2, 3072 }
  0xd8   : > { %p498_p9 = scmp.ne.s32.totalorder %s776_s27, %s497_s24  ;;  %p502_p5 = scmp.lt.u32.totalorder %s776_s27, %s833_s2 }
  0xd9   : > { %p503_p2 = scmp.lt.u32.totalorder %s501_s29, %s497_s24  ;;  %p505_p4 = scmp.lt.u32.totalorder %s497_s24, %s776_s27 }
  0xda   : > { %p499_p1 = pnand %p498_p9, %p671_p12 }
  0xdb   : > { %p504_p13 = por %p503_p2, %p502_p5 }
  0xdc   : > { %p500_p0 = pneg %p499_p1 }
  0xdd   : > { %p506_p6 = por %p505_p4, %p504_p13 }
  0xdf   : > { %p507_p8 = pnand %p506_p6, %p500_p0 }
  0xe1   : > { %510 = shalt.err (!%p507_p8)
}
  0xe2   : > { %s561_s17 = smov 128  }
  0xe3   : > { %370 = dma.vmem_to_hbm [thread:$0]  (%p671_p12), %s780_s25, 1536, %s776_s27, %s253_s28, %s561_s17, %s561_s17, %s559_s4  }
  0xe4 PF: > { %s281_s15 = sand.u32 1, %s541_s9   ;;  %p848_p10 = scmp.ne.s32.totalorder %s838_s16, 0 }
  0xe5   : > { %p849_p11 = scmp.ge.s32.totalorder %s553_s12, 2  ;;  %s282_s5 = scalar_lea.sflag [#allocation4], %s281_s15 }
  0xe7   : > { %p381_p3 = pnand %p849_p11, %p848_p10 }
  0xe9   : > { %536 = dma.done.wait (!%p381_p3), %s282_s5, 1536  }
  0xea   : > { %538 = vsyncadd (!%p381_p3), %s282_s5, 4294965760  ;;  %p16_p7 = scmp.ge.s32.totalorder %s633_s21, 4   ;;  %s850_s9 = smov %s545_s10 }
  0xeb   : > { %s851_s10 = smov %s549_s11  ;;  %s852_s11 = smov %s667_s8 }
  0xec   : > { %s853_s12 = smov %s633_s21  ;;  %18 = sbr.rel (!%p16_p7) target bundleno = 6 (0x6), region = 77 }
  0xf3   :  { %287 = vsyncpa [#allocation3], 1 }
  0xf4   :  { %289 = vsyncpa [#allocation3 + $0x1], 1 }
  0xf5   :  { %290 = vsyncpa [#allocation6], 1 }
  0xf6   :  { %291 = vsyncpa [#allocation4], 1 }
  0xf7   :  { %293 = vsyncpa [#allocation4 + $0x1], 1 }

</bundles_post_ra>
